<compile_context>
chip_gen: v6e
topology: v6e:2x2x1
jax: 0.10.0
libtpu: 0.0.40
codegen_flags: <defaults>
</compile_context>

<pallas_src>
import functools

import jax
import jax.numpy as jnp
from jax.experimental import pallas as pl
from jax.experimental.pallas import tpu as pltpu


def _swiglu_ffn_kernel(x_ref, w1_ref, w2_ref, w3_ref, o_ref, acc_ref):
    # x_ref : (tm, emb)      token tile (re-used across the hidden axis)
    # w1_ref: (emb, tk)      hidden-chunk of fc1 weights (pre-transposed)
    # w2_ref: (emb, tk)      hidden-chunk of fc2 weights (pre-transposed)
    # w3_ref: (tk, emb)      hidden-chunk of fc3 weights (pre-transposed)
    # o_ref : (tm, emb)      output tile (constant across the hidden axis)
    # acc_ref: VMEM (tm, emb) f32 accumulator for the output projection
    k = pl.program_id(1)

    @pl.when(k == 0)
    def _():
        acc_ref[...] = jnp.zeros_like(acc_ref)

    x = x_ref[...]  # native dtype (bf16/f32) straight into the MXU
    h1 = jnp.dot(x, w1_ref[...], preferred_element_type=jnp.float32)
    h2 = jnp.dot(x, w2_ref[...], preferred_element_type=jnp.float32)

    # silu gating in f32 on the VPU/EUP (h1/h2 are already f32 accumulators).
    gated = (h1 * jax.nn.sigmoid(h1)) * h2

    # Feed the MXU in the weight dtype again; accumulate in f32.
    acc_ref[...] += jnp.dot(
        gated.astype(w3_ref.dtype), w3_ref[...],
        preferred_element_type=jnp.float32)

    @pl.when(k == pl.num_programs(1) - 1)
    def _():
        o_ref[...] = acc_ref[...].astype(o_ref.dtype)


def _pick_hidden_tile(hidden, target, align):
    """Largest multiple of `align` that divides `hidden` and is <= target."""
    if hidden <= target:
        return hidden
    t = (target // align) * align
    while t >= align:
        if hidden % t == 0:
            return t
        t -= align
    return hidden  # fall back to full hidden (always divides itself)


def prepare_weights(w1, w2, w3):
    """Transpose nn.Linear-layout weights ONCE, outside the jitted hot path.

    w1, w2: (hidden, emb)  ->  (emb, hidden)
    w3:     (emb, hidden)  ->  (hidden, emb)
    """
    return w1.T, w2.T, w3.T


@jax.jit
def su_feed_forward(x, w1t, w2t, w3t):
    """x: (..., emb_dim); w1t/w2t: (emb, hidden); w3t: (hidden, emb)."""
    orig_shape = x.shape
    emb_dim = orig_shape[-1]
    hidden_dim = w1t.shape[1]

    x2d = x.reshape(-1, emb_dim)
    tokens = x2d.shape[0]

    # --- tile selection -----------------------------------------------------
    # Token tile: big enough (>=256 rows) that the grid has several steps and
    # DMA/compute overlap; clamped to the full token count for tiny shapes.
    tm = min(tokens, 256)
    # Hidden tile: 512-wide chunks (multiple of 256 -> saturates the v6e/v7x
    # MXU; also a multiple of 128 for v5e).  Must divide hidden so the
    # accumulation never sees padded garbage columns.
    tk = _pick_hidden_tile(hidden_dim, target=512, align=128)

    num_token_tiles = pl.cdiv(tokens, tm)
    num_hidden_tiles = hidden_dim // tk
    grid = (num_token_tiles, num_hidden_tiles)

    # --- VMEM budget (double-buffered weight chunks + acts + accumulator) ---
    elt = x.dtype.itemsize
    working_set = (
        2 * (tm * emb_dim * elt)                       # x tile, double-buffered
        + 2 * (2 * emb_dim * tk + tk * emb_dim) * w1t.dtype.itemsize  # w1/w2/w3 chunks
        + tm * emb_dim * 4                             # f32 accumulator
        + 2 * (tm * emb_dim * elt)                     # out tile, double-buffered
    )
    vmem_limit = min(48 * 1024 * 1024,                 # stay inside v7x's 64 MiB
                     max(32 * 1024 * 1024, int(1.5 * working_set)))

    # --- cost estimate (advisory, helps XLA schedule surrounding ops) -------
    flops = 2 * tokens * emb_dim * hidden_dim * 3
    transcendentals = tokens * hidden_dim              # sigmoid
    bytes_accessed = (
        x2d.size * elt + tokens * emb_dim * elt
        + (w1t.size + w2t.size + w3t.size) * w1t.dtype.itemsize)
    cost = pl.CostEstimate(flops=flops, transcendentals=transcendentals,
                           bytes_accessed=bytes_accessed)

    out2d = pl.pallas_call(
        _swiglu_ffn_kernel,
        out_shape=jax.ShapeDtypeStruct((tokens, emb_dim), x.dtype),
        grid_spec=pltpu.PrefetchScalarGridSpec(
            num_scalar_prefetch=0,
            grid=grid,
            in_specs=[
                pl.BlockSpec((tm, emb_dim), lambda i, k: (i, 0)),    # x tile
                pl.BlockSpec((emb_dim, tk), lambda i, k: (0, k)),    # w1t chunk
                pl.BlockSpec((emb_dim, tk), lambda i, k: (0, k)),    # w2t chunk
                pl.BlockSpec((tk, emb_dim), lambda i, k: (k, 0)),    # w3t chunk
            ],
            out_specs=pl.BlockSpec((tm, emb_dim), lambda i, k: (i, 0)),
            scratch_shapes=[pltpu.VMEM((tm, emb_dim), jnp.float32)],
        ),
        compiler_params=pltpu.CompilerParams(
            dimension_semantics=("parallel", "arbitrary"),
            vmem_limit_bytes=vmem_limit,
        ),
        cost_estimate=cost,
    )(x2d, w1t, w2t, w3t)

    return out2d.reshape(orig_shape)


def _reference(x, w1, w2, w3):
    h1 = x @ w1.T
    h2 = x @ w2.T
    gated = jax.nn.silu(h1) * h2
    return gated @ w3.T


if __name__ == "__main__":
    # config: emb_dim=32, hidden_dim=64, dtype=float32 (small demo shapes)
    batch, seq, emb_dim, hidden_dim = 2, 8, 32, 64
    dtype = jnp.float32

    key = jax.random.PRNGKey(0)
    kx, k1, k2, k3 = jax.random.split(key, 4)

    x = jax.random.normal(kx, (batch, seq, emb_dim), dtype=dtype)
    # nn.Linear weight shapes: fc1/fc2 -> (hidden, emb), fc3 -> (emb, hidden)
    w1 = jax.random.normal(k1, (hidden_dim, emb_dim), dtype=dtype) * 0.05
    w2 = jax.random.normal(k2, (hidden_dim, emb_dim), dtype=dtype) * 0.05
    w3 = jax.random.normal(k3, (emb_dim, hidden_dim), dtype=dtype) * 0.05

    # Transpose once, outside the jitted hot path (store pre-transposed in
    # real deployments).
    w1t, w2t, w3t = prepare_weights(w1, w2, w3)

    out = su_feed_forward(x, w1t, w2t, w3t)
    out = jax.block_until_ready(out)

    ref = _reference(x, w1, w2, w3)
    assert out.shape == (batch, seq, emb_dim)
    assert jnp.allclose(out, ref, atol=1e-4, rtol=1e-4), "mismatch vs reference"

    print("KERNEL_OK")
</pallas_src>

<mosaic_0001>
module attributes {stable_mosaic.version = 11 : i64} {
  func.func @_swiglu_ffn_kernel(%arg0: i32, %arg1: i32, %arg2: memref<16x32xf32, #tpu.memory_space<vmem>>, %arg3: memref<32x64xf32, #tpu.memory_space<vmem>>, %arg4: memref<32x64xf32, #tpu.memory_space<vmem>>, %arg5: memref<64x32xf32, #tpu.memory_space<vmem>>, %arg6: memref<16x32xf32, #tpu.memory_space<vmem>>, %arg7: memref<16x32xf32, #tpu.memory_space<vmem>>) attributes {dimension_semantics = [#tpu.dimension_semantics<parallel>, #tpu.dimension_semantics<arbitrary>], iteration_bounds = array<i64: 1, 1>, scalar_prefetch = 0 : i64, scratch_operands = 1 : i64, tpu.core_type = #tpu.core_type<tc>, window_params = [{transform_indices = @transform_0, window_bounds = array<i64: 16, 32>}, {transform_indices = @transform_1, window_bounds = array<i64: 32, 64>}, {transform_indices = @transform_2, window_bounds = array<i64: 32, 64>}, {transform_indices = @transform_3, window_bounds = array<i64: 64, 32>}, {transform_indices = @transform_4, window_bounds = array<i64: 16, 32>}]} {
    %c0_i32 = arith.constant 0 : i32
    %0 = arith.cmpi eq, %arg1, %c0_i32 : i32
    %1 = arith.extui %0 : i1 to i32
    %c0_i32_0 = arith.constant 0 : i32
    %2 = arith.cmpi ne, %1, %c0_i32_0 : i32
    scf.if %2 {
      %cst_17 = arith.constant 0.000000e+00 : f32
      %23 = vector.broadcast %cst_17 : f32 to vector<16x32xf32>
      %c0_18 = arith.constant 0 : index
      %c0_19 = arith.constant 0 : index
      %24 = vector.load %arg7[%c0_18, %c0_19] : memref<16x32xf32, #tpu.memory_space<vmem>>, vector<16x32xf32>
      tpu.vector_store %arg7[%c0_18, %c0_19], %23 {strides = array<i32>} : memref<16x32xf32, #tpu.memory_space<vmem>>, vector<16x32xf32>,
    } else {
    }
    %c0 = arith.constant 0 : index
    %c0_1 = arith.constant 0 : index
    %3 = vector.load %arg2[%c0, %c0_1] : memref<16x32xf32, #tpu.memory_space<vmem>>, vector<16x32xf32>
    %c0_2 = arith.constant 0 : index
    %c0_3 = arith.constant 0 : index
    %4 = vector.load %arg3[%c0_2, %c0_3] : memref<32x64xf32, #tpu.memory_space<vmem>>, vector<32x64xf32>
    %cst = arith.constant dense<0.000000e+00> : vector<16x64xf32>
    %5 = tpu.matmul %3, %4, %cst {dimension_numbers = #tpu.dot_dimension_numbers<[1], [0], [0], [1], [0, 0, 1, 1], [], []>} : vector<16x32xf32>, vector<32x64xf32>, vector<16x64xf32> -> vector<16x64xf32>
    %c0_4 = arith.constant 0 : index
    %c0_5 = arith.constant 0 : index
    %6 = vector.load %arg4[%c0_4, %c0_5] : memref<32x64xf32, #tpu.memory_space<vmem>>, vector<32x64xf32>
    %cst_6 = arith.constant dense<0.000000e+00> : vector<16x64xf32>
    %7 = tpu.matmul %3, %6, %cst_6 {dimension_numbers = #tpu.dot_dimension_numbers<[1], [0], [0], [1], [0, 0, 1, 1], [], []>} : vector<16x32xf32>, vector<32x64xf32>, vector<16x64xf32> -> vector<16x64xf32>
    %8 = arith.negf %5 : vector<16x64xf32>
    %9 = math.exp %8 : vector<16x64xf32>
    %cst_7 = arith.constant 1.000000e+00 : f32
    %10 = vector.broadcast %cst_7 : f32 to vector<16x64xf32>
    %11 = arith.addf %10, %9 : vector<16x64xf32>
    %12 = arith.divf %10, %11 : vector<16x64xf32>
    %13 = arith.mulf %5, %12 : vector<16x64xf32>
    %14 = arith.mulf %13, %7 : vector<16x64xf32>
    %c0_8 = arith.constant 0 : index
    %c0_9 = arith.constant 0 : index
    %15 = vector.load %arg7[%c0_8, %c0_9] : memref<16x32xf32, #tpu.memory_space<vmem>>, vector<16x32xf32>
    %c0_10 = arith.constant 0 : index
    %c0_11 = arith.constant 0 : index
    %16 = vector.load %arg5[%c0_10, %c0_11] : memref<64x32xf32, #tpu.memory_space<vmem>>, vector<64x32xf32>
    %cst_12 = arith.constant dense<0.000000e+00> : vector<16x32xf32>
    %17 = tpu.matmul %14, %16, %cst_12 {dimension_numbers = #tpu.dot_dimension_numbers<[1], [0], [0], [1], [0, 0, 1, 1], [], []>} : vector<16x64xf32>, vector<64x32xf32>, vector<16x32xf32> -> vector<16x32xf32>
    %18 = arith.addf %15, %17 : vector<16x32xf32>
    %c0_13 = arith.constant 0 : index
    %c0_14 = arith.constant 0 : index
    %19 = vector.load %arg7[%c0_13, %c0_14] : memref<16x32xf32, #tpu.memory_space<vmem>>, vector<16x32xf32>
    tpu.vector_store %arg7[%c0_13, %c0_14], %18 {strides = array<i32>} : memref<16x32xf32, #tpu.memory_space<vmem>>, vector<16x32xf32>,
    %c0_i32_15 = arith.constant 0 : i32
    %20 = arith.cmpi eq, %arg1, %c0_i32_15 : i32
    %21 = arith.extui %20 : i1 to i32
    %c0_i32_16 = arith.constant 0 : i32
    %22 = arith.cmpi ne, %21, %c0_i32_16 : i32
    scf.if %22 {
      %c0_17 = arith.constant 0 : index
      %c0_18 = arith.constant 0 : index
      %23 = vector.load %arg7[%c0_17, %c0_18] : memref<16x32xf32, #tpu.memory_space<vmem>>, vector<16x32xf32>
      %c0_19 = arith.constant 0 : index
      %c0_20 = arith.constant 0 : index
      %24 = vector.load %arg6[%c0_19, %c0_20] : memref<16x32xf32, #tpu.memory_space<vmem>>, vector<16x32xf32>
      tpu.vector_store %arg6[%c0_19, %c0_20], %23 {strides = array<i32>} : memref<16x32xf32, #tpu.memory_space<vmem>>, vector<16x32xf32>,
    } else {
    }
    return
  }
  func.func @transform_0(%arg0: i32, %arg1: i32) -> (i32, i32) {
    %c0_i32 = arith.constant 0 : i32
    %c0_i32_0 = arith.constant 0 : i32
    return %arg0, %c0_i32 : i32, i32
  }
  func.func @transform_1(%arg0: i32, %arg1: i32) -> (i32, i32) {
    %c0_i32 = arith.constant 0 : i32
    %c0_i32_0 = arith.constant 0 : i32
    return %c0_i32, %arg1 : i32, i32
  }
  func.func @transform_2(%arg0: i32, %arg1: i32) -> (i32, i32) {
    %c0_i32 = arith.constant 0 : i32
    %c0_i32_0 = arith.constant 0 : i32
    return %c0_i32, %arg1 : i32, i32
  }
  func.func @transform_3(%arg0: i32, %arg1: i32) -> (i32, i32) {
    %c0_i32 = arith.constant 0 : i32
    %c0_i32_0 = arith.constant 0 : i32
    return %arg1, %c0_i32 : i32, i32
  }
  func.func @transform_4(%arg0: i32, %arg1: i32) -> (i32, i32) {
    %c0_i32 = arith.constant 0 : i32
    %c0_i32_0 = arith.constant 0 : i32
    return %arg0, %c0_i32 : i32, i32
  }
}

</mosaic_0001>

<bundles_post_ra>
// kernel: su_feed_forward.1
= control target key start
LH: loop header
LB: loop body
LE: loop exit
PB: predicated region body
PF: predicated region fallthrough
CT: control target
= control target key end

     0   :  { %vm22_vm0 = vcmask 261120   ;;  %s528_s0 = inlined_call_operand.vmem [shape: f32[16,32], index: 0, kind: input, shape index: {}]   ;;  %s529_s1 = inlined_call_operand.vmem [shape: f32[32,64], index: 1, kind: input, shape index: {}]   ;;  %s530_s2 = inlined_call_operand.vmem [shape: f32[32,64], index: 2, kind: input, shape index: {}]   ;;  %s531_s3 = inlined_call_operand.vmem [shape: f32[64,32], index: 3, kind: input, shape index: {}]   ;;  %s532_s4 = inlined_call_operand.hbm [shape: f32[16,32], index: 4, kind: output, shape index: {}]  }
   0x1   :  { %v30_v0 = vld [vmem:[%s529_s1 + $0x18] sm:$0xff]  ;;  %v29_v1 = vld [vmem:[%s529_s1 + $0x10] sm:$0xff]  ;;  %v25_v2 = vld [vmem:[%s528_s0] sm:$0xff] }
   0x2   :  { %357 = vmatprep.subr.mxu1 %v30_v0  ;;  %v28_v3 = vld [vmem:[%s529_s1 + $0x8] sm:$0xff]  ;;  %365 = vmatprep.mubr.msk.f32.mxu1 %vm22_vm0, %v25_v2 }
   0x3   :  { %358 = vmatpush3.msra.mxu1 %v30_v0 }
   0x4   :  { %359 = vmatprep.subr.mxu1 %v29_v1 }
   0x5   :  { %9 = vsyncpa [#allocation4], 0  ;;  %360 = vmatpush3.msra.mxu1 %v29_v1  ;;  %v27_v4 = vld [vmem:[%s529_s1] sm:$0xff]  ;;  %v26_v5 = vld [vmem:[%s528_s0 + $0x8] sm:$0xff]  ;;  %v432_v18 = vmov 0.0   ;;  %vm218_vm1 = vcmask 523264  }
   0x6   :  { %361 = vmatprep.subr.mxu1 %v28_v3  ;;  %v116_v6 = vld [vmem:[%s530_s2 + $0x18] sm:$0xff]  ;;  %v115_v7 = vld [vmem:[%s530_s2 + $0x10] sm:$0xff]  ;;  %v114_v8 = vld [vmem:[%s530_s2 + $0x8] sm:$0xff]  ;;  %24 = vst.msk [vmem:[#allocation2 + $0x8] sm:$0xff] %vm22_vm0, %v432_v18 }
   0x7   :  { %362 = vmatpush3.msra.mxu1 %v28_v3  ;;  %v113_v9 = vld [vmem:[%s530_s2] sm:$0xff]  ;;  %v217_v10 = vld [vmem:[%s531_s3 + $0x38] sm:$0xff]  ;;  %v216_v11 = vld [vmem:[%s531_s3 + $0x30] sm:$0xff]  ;;  %23 = vst.msk [vmem:[#allocation2] sm:$0xff] %vm22_vm0, %v432_v18 }
   0x8   :  { %363 = vmatprep.subr.mxu1 %v27_v4  ;;  %379 = vmatprep.subr.mxu0 %v217_v10  ;;  %v215_v12 = vld [vmem:[%s531_s3 + $0x28] sm:$0xff]  ;;  %v214_v13 = vld [vmem:[%s531_s3 + $0x20] sm:$0xff]  ;;  %v213_v14 = vld [vmem:[%s531_s3 + $0x18] sm:$0xff] }
   0x9   :  { %364 = vmatpush3.msra.mxu1 %v27_v4  ;;  %380 = vmatpush3.msra.mxu0 %v217_v10  ;;  %v212_v15 = vld [vmem:[%s531_s3 + $0x10] sm:$0xff]  ;;  %v211_v16 = vld [vmem:[%s531_s3 + $0x8] sm:$0xff]  ;;  %v210_v17 = vld [vmem:[%s531_s3] sm:$0xff]  ;;  %s433_s3 = smov [#allocation3]  }
   0xa   :  { %366 = vmatmul.mubr.msk.f32.vlgmr.msra.gmra.mxu1 %vm22_vm0, %v26_v5  ;;  %368 = vmatprep.subr.mxu1 %v116_v6  ;;  %s316_s22 = sshll.u32 %s433_s3, 4  ;;  %s317_s22 = int_to_ptr.vmem [resolvable:$true] %s316_s22 }
   0xb   :  { %369 = vmatpush3.msra.mxu1 %v116_v6  ;;  %376 = vmatprep.mubr.msk.f32.mxu1 %vm22_vm0, %v25_v2  ;;  %s410_s23 = scalar_lea.vmem %s317_s22, 256  ;;  %p415_p1 = scmp.lt.s32.totalorder %s317_s22, %s317_s22 }
   0xc   :  { %370 = vmatprep.subr.mxu1 %v115_v7  ;;  %381 = vmatprep.subr.mxu0 %v216_v11  ;;  %p411_p0 = scmp.ne.s32.totalorder %s317_s22, %s410_s23  ;;  %p416_p2 = scmp.lt.s32.totalorder %s410_s23, %s410_s23 }
   0xd   :  { %371 = vmatpush3.msra.mxu1 %v115_v7  ;;  %382 = vmatpush3.msra.mxu0 %v216_v11  ;;  %v209_v35 = vld [vmem:[#allocation2 + $0x8] sm:$0xff] }
   0xe   :  { %372 = vmatprep.subr.mxu1 %v114_v8  ;;  %383 = vmatprep.subr.mxu0 %v215_v12  ;;  %v208_v37 = vld [vmem:[#allocation2] sm:$0xff]  ;;  %p417_p3 = por %p416_p2, %p415_p1 }
   0xf   :  { %373 = vmatpush3.msra.mxu1 %v114_v8  ;;  %384 = vmatpush3.msra.mxu0 %v215_v12 }
  0x10   :  { %374 = vmatprep.subr.mxu1 %v113_v9  ;;  %385 = vmatprep.subr.mxu0 %v214_v13  ;;  %p418_p4 = pnand %p417_p3, %p411_p0 }
  0x11   :  { %375 = vmatpush3.msra.mxu1 %v113_v9  ;;  %386 = vmatpush3.msra.mxu0 %v214_v13 }
  0x12   :  { %377 = vmatmul.mubr.msk.f32.vlgmr.msra.gmra.mxu1 %vm22_vm0, %v26_v5  ;;  %387 = vmatprep.subr.mxu0 %v213_v14 }
  0x13   :  { %388 = vmatpush3.msra.mxu0 %v213_v14 }
  0x14   :  { %389 = vmatprep.subr.mxu0 %v212_v15 }
  0x15   :  { %390 = vmatpush3.msra.mxu0 %v212_v15 }
  0x16   :  { %391 = vmatprep.subr.mxu0 %v211_v16 }
  0x17   :  { %392 = vmatpush3.msra.mxu0 %v211_v16 }
  0x18   :  { %393 = vmatprep.subr.mxu0 %v210_v17 }
  0x19   :  { %394 = vmatpush3.msra.mxu0 %v210_v17 }
  0xca   :  { %v367_v19 = vpop.f32.mrf.mxu1 }
  0xcb   :  { %v332_v20 = vmul.f32 -1.442695, %v367_v19 }
  0xcc   :  { %v104_v21 = vpop.f32.mrf.mxu1 }
  0xcd   :  { %402 = vpow2.f32 %v332_v20  ;;  %v331_v22 = vmul.f32 -1.442695, %v104_v21 }
  0xcf   :  { %404 = vpow2.f32 %v331_v22 }
  0xd2   :  { %v378_v28 = vpop.f32.mrf.mxu1 }
  0xd4   :  { %v183_v32 = vpop.f32.mrf.mxu1 }
  0xda   :  { %v403_v23 = vpop.eup %402 }
  0xdb   :  { %v199_v24 = vadd.f32 1.0, %v403_v23 }
  0xdc   :  { %v405_v25 = vpop.eup %404 }
  0xdd   :  { %406 = vrcp.f32 %v199_v24  ;;  %v198_v26 = vadd.f32 1.0, %v405_v25 }
  0xdf   :  { %408 = vrcp.f32 %v198_v26 }
  0xea   :  { %v407_v27 = vpop.eup %406 }
  0xeb   :  { %v205_v30 = vmul.f32 %v407_v27, %v367_v19 }
  0xec   :  { %v409_v29 = vpop.eup %408 }
  0xed   :  { %v204_v31 = vmul.f32 %v409_v29, %v104_v21  ;;  %v207_v34 = vmul.f32 %v378_v28, %v205_v30 }
  0xef   :  { %v206_v33 = vmul.f32 %v204_v31, %v183_v32 }
  0xf1   :  { %395 = vmatprep.mubr.msk.f32.mxu0 %vm218_vm1, %v206_v33 }
  0xf2   :  { %396 = vmatmul.mubr.msk.f32.vlgmr.msra.gmra.mxu0 %vm218_vm1, %v207_v34 }
 0x1b2   :  { %v397_v36 = vpop.f32.mrf.mxu0 }
 0x1b3   :  { %v301_v38 = vadd.f32 %v397_v36, %v209_v35 }
 0x1b4   :  { %v291_v39 = vpop.f32.mrf.mxu0 }
 0x1b5   :  { %303 = vst.msk [vmem:[#allocation2 + $0x8] sm:$0xff] %vm22_vm0, %v301_v38  ;;  %v300_v40 = vadd.f32 %v291_v39, %v208_v37 }
 0x1b7   :  { %302 = vst.msk [vmem:[#allocation2] sm:$0xff] %vm22_vm0, %v300_v40 }
 0x1bc   :  { %v308_v41 = vld [vmem:[#allocation2 + $0x8] sm:$0xff] }
 0x1bd   :  { %310 = vst.msk [vmem:[#allocation3 + $0x8] sm:$0xff] %vm22_vm0, %v308_v41 }
 0x1be   :  { %v307_v42 = vld [vmem:[#allocation2] sm:$0xff] }
 0x1bf   :  { %309 = vst.msk [vmem:[#allocation3] sm:$0xff] %vm22_vm0, %v307_v42 }
 0x1c0   :  { %421 = shalt.err (!%p418_p4)
}
 0x1c1   :  { %s434_s24 = smov 128   ;;  %s435_s25 = smov 8  }
 0x1c2   :  { %322 = dma.vmem_to_hbm [thread:$0]  %s317_s22, 256, %s532_s4, [#allocation4], %s434_s24, %s434_s24, %s435_s25  }
 0x1c3   :  { %430 = dma.done.wait [#allocation4], 256  }
 0x1c4   :  { %431 = vsyncadd [#allocation4], 4294967040 }
 0x1c5   :  { %326 = vsyncpa [#allocation4], 1 }

</bundles_post_ra>
